<compile_context>
chip_gen: v7x
topology: tpu7x:2x2x1
jax: 0.10.0
libtpu: 0.0.40
codegen_flags: <defaults>
</compile_context>

<pallas_src>
import functools

import jax
import jax.numpy as jnp
from jax.experimental import pallas as pl
from jax.experimental.pallas import tpu as pltpu


def skip_router_kernel(x_ref, w_ref, b_ref, o_ref, *, indim, outdim):
    # x_ref: VMEM [tb, indim]        (rows of x, untransposed)
    # w_ref: SMEM [indim * outdim]   (folded weight, row-major [indim, outdim])
    # b_ref: SMEM [outdim]           (folded bias)
    # o_ref: VMEM [tb, outdim]
    x = x_ref[...].astype(jnp.float32)  # [tb, indim]
    for o in range(outdim):
        # Exact f32 VPU FMAs; the depth-`indim` loop is unrolled at trace time.
        acc = x[:, 0:1] * w_ref[0 * outdim + o]
        for j in range(1, indim):
            acc = acc + x[:, j:j + 1] * w_ref[j * outdim + o]
        acc = acc + b_ref[o]
        o_ref[:, o:o + 1] = acc.astype(o_ref.dtype)


def fold_skip_router_params(w1, b1, w2, b2):
    """Fold the two linears into (W_eff flat [indim*outdim], b_eff [outdim]).

    Input-independent: call once per parameter update, not per forward call.
    Weights are in [in, out] layout (i.e. W^T relative to PyTorch's [out, in]).
    """
    hp = jax.lax.Precision.HIGHEST
    w_eff = jnp.dot(w1, w2, preferred_element_type=jnp.float32, precision=hp)      # [indim, outdim]
    b_eff = jnp.dot(b1, w2, preferred_element_type=jnp.float32, precision=hp) + b2  # [1, outdim]
    return w_eff.reshape(-1), b_eff.reshape(-1)


def _pick_batch_tile(B):
    # Small B: one (8-aligned, possibly padded) block — launch-overhead bound
    # anyway.  Large B: fixed tile capped at 2048 rows, sized so the grid has
    # >=4 steps (v7x 2-TC split + pipelining); per-step VMEM stays ~4 MiB.
    if B <= 1024:
        return max(8, -(-B // 8) * 8)
    tb = min(2048, (B // 4) // 8 * 8)
    return max(tb, 128)


def skip_router_fused(x, w_flat, b_flat):
    """x: [B, indim], w_flat: [indim*outdim], b_flat: [outdim] -> [B, outdim]."""
    B, indim = x.shape
    outdim = b_flat.shape[0]

    tb = _pick_batch_tile(B)
    grid = (pl.cdiv(B, tb),)

    kernel = functools.partial(skip_router_kernel, indim=indim, outdim=outdim)

    return pl.pallas_call(
        kernel,
        out_shape=jax.ShapeDtypeStruct((B, outdim), x.dtype),
        grid=grid,
        in_specs=[
            # x row tile, streamed straight from HBM — no wrapper transpose.
            pl.BlockSpec((tb, indim), lambda i: (i, 0)),
            # Folded weight / bias as SMEM scalars (no VMEM pipeline needed).
            pl.BlockSpec(memory_space=pltpu.MemorySpace.SMEM),
            pl.BlockSpec(memory_space=pltpu.MemorySpace.SMEM),
        ],
        out_specs=pl.BlockSpec((tb, outdim), lambda i: (i, 0)),
        compiler_params=pltpu.CompilerParams(
            dimension_semantics=("parallel",),  # shards grid across v7x's 2 TCs
        ),
    )(x, w_flat, b_flat)


def skip_router(x, w1, b1, w2, b2):
    """Convenience wrapper: fold params, then run the fused kernel."""
    w_flat, b_flat = fold_skip_router_params(w1, b1, w2, b2)
    return skip_router_fused(x, w_flat, b_flat)


if __name__ == "__main__":
    indim, hidden_dim, outdim = 3, 128, 1
    batch = 8

    key = jax.random.PRNGKey(0)
    kx, k1, k2, k3, k4 = jax.random.split(key, 5)

    # Deterministic parameter init (mimics PyTorch's default uniform bound).
    bound1 = 1.0 / (indim ** 0.5)
    bound2 = 1.0 / (hidden_dim ** 0.5)
    # Weights stored as [in, out] (i.e. W^T relative to PyTorch's [out, in]).
    w1 = jax.random.uniform(k1, (indim, hidden_dim), jnp.float32, -bound1, bound1)
    b1 = jax.random.uniform(k2, (1, hidden_dim), jnp.float32, -bound1, bound1)
    w2 = jax.random.uniform(k3, (hidden_dim, outdim), jnp.float32, -bound2, bound2)
    b2 = jax.random.uniform(k4, (1, outdim), jnp.float32, -bound2, bound2)

    x = jax.random.normal(kx, (batch, indim), jnp.float32)

    # Fold once (parameter-only work), then run the kernel.
    w_flat, b_flat = fold_skip_router_params(w1, b1, w2, b2)
    out = jax.block_until_ready(skip_router_fused(x, w_flat, b_flat))

    # Reference: the unfused two-linear forward in exact f32.
    hp = jax.lax.Precision.HIGHEST
    ref = jnp.dot(jnp.dot(x, w1, precision=hp) + b1, w2, precision=hp) + b2

    assert out.shape == (batch, outdim)
    assert jnp.allclose(out, ref, atol=1e-4, rtol=1e-4), (
        f"max abs err {jnp.max(jnp.abs(out - ref))}")

    print("KERNEL_OK")
</pallas_src>

<mosaic_0001>
module attributes {stable_mosaic.version = 11 : i64} {
  func.func @skip_router_kernel(%arg0: i32, %arg1: memref<8x3xf32, #tpu.memory_space<vmem>>, %arg2: memref<3xf32, #tpu.memory_space<smem>>, %arg3: memref<1xf32, #tpu.memory_space<smem>>, %arg4: memref<8x1xf32, #tpu.memory_space<vmem>>) attributes {dimension_semantics = [#tpu.dimension_semantics<parallel>], iteration_bounds = array<i64: 1>, scalar_prefetch = 0 : i64, scratch_operands = 0 : i64, tpu.core_type = #tpu.core_type<tc>, window_params = [{transform_indices = @transform_0, window_bounds = array<i64: 8, 3>}, {transform_indices = @transform_1, window_bounds = array<i64: 3>}, {transform_indices = @transform_2, window_bounds = array<i64: 1>}, {transform_indices = @transform_3, window_bounds = array<i64: 8, 1>}]} {
    %c0 = arith.constant 0 : index
    %c0_0 = arith.constant 0 : index
    %0 = vector.load %arg1[%c0, %c0_0] : memref<8x3xf32, #tpu.memory_space<vmem>>, vector<8x3xf32>
    %1 = vector.extract_strided_slice %0 {offsets = [0, 0], sizes = [8, 1], strides = [1, 1]} : vector<8x3xf32> to vector<8x1xf32>
    %c0_1 = arith.constant 0 : index
    %2 = memref.load %arg2[%c0_1] : memref<3xf32, #tpu.memory_space<smem>>
    %3 = vector.broadcast %2 : f32 to vector<8x1xf32>
    %4 = arith.mulf %1, %3 : vector<8x1xf32>
    %5 = vector.extract_strided_slice %0 {offsets = [0, 1], sizes = [8, 1], strides = [1, 1]} : vector<8x3xf32> to vector<8x1xf32>
    %c1 = arith.constant 1 : index
    %6 = memref.load %arg2[%c1] : memref<3xf32, #tpu.memory_space<smem>>
    %7 = vector.broadcast %6 : f32 to vector<8x1xf32>
    %8 = arith.mulf %5, %7 : vector<8x1xf32>
    %9 = arith.addf %4, %8 : vector<8x1xf32>
    %10 = vector.extract_strided_slice %0 {offsets = [0, 2], sizes = [8, 1], strides = [1, 1]} : vector<8x3xf32> to vector<8x1xf32>
    %c2 = arith.constant 2 : index
    %11 = memref.load %arg2[%c2] : memref<3xf32, #tpu.memory_space<smem>>
    %12 = vector.broadcast %11 : f32 to vector<8x1xf32>
    %13 = arith.mulf %10, %12 : vector<8x1xf32>
    %14 = arith.addf %9, %13 : vector<8x1xf32>
    %c0_2 = arith.constant 0 : index
    %15 = memref.load %arg3[%c0_2] : memref<1xf32, #tpu.memory_space<smem>>
    %16 = vector.broadcast %15 : f32 to vector<8x1xf32>
    %17 = arith.addf %14, %16 : vector<8x1xf32>
    %c0_3 = arith.constant 0 : index
    %c0_4 = arith.constant 0 : index
    %18 = vector.load %arg4[%c0_3, %c0_4] : memref<8x1xf32, #tpu.memory_space<vmem>>, vector<8x1xf32>
    tpu.vector_store %arg4[%c0_3, %c0_4], %17 {strides = array<i32>} : memref<8x1xf32, #tpu.memory_space<vmem>>, vector<8x1xf32>,
    return
  }
  func.func @transform_0(%arg0: i32) -> (i32, i32) {
    %c0_i32 = arith.constant 0 : i32
    %c0_i32_0 = arith.constant 0 : i32
    return %arg0, %c0_i32 : i32, i32
  }
  func.func @transform_1(%arg0: i32) -> i32 {
    %c0_i32 = arith.constant 0 : i32
    %c0_i32_0 = arith.constant 0 : i32
    return %c0_i32 : i32
  }
  func.func @transform_2(%arg0: i32) -> i32 {
    %c0_i32 = arith.constant 0 : i32
    %c0_i32_0 = arith.constant 0 : i32
    return %c0_i32 : i32
  }
  func.func @transform_3(%arg0: i32) -> (i32, i32) {
    %c0_i32 = arith.constant 0 : i32
    %c0_i32_0 = arith.constant 0 : i32
    return %arg0, %c0_i32 : i32, i32
  }
}

</mosaic_0001>

<bundles_post_ra>
// kernel: tpu_custom_call.1
= control target key start
LH: loop header
LB: loop body
LE: loop exit
PB: predicated region body
PF: predicated region fallthrough
CT: control target
= control target key end

     0   :  { %9 = vsyncpa [#allocation4], 0  ;;  %s112_s0 = inlined_call_operand.vmem [shape: f32[8,3], index: 0, kind: input, shape index: {}]   ;;  %s113_s1 = inlined_call_operand.vmem [shape: f32[3], index: 1, kind: input, shape index: {}]   ;;  %s114_s2 = inlined_call_operand.<no memory space> [shape: f32[1], index: 2, kind: input, shape index: {}]   ;;  %s115_s3 = inlined_call_operand.vmem [shape: f32[8,1], index: 3, kind: output, shape index: {}]  }
   0x1   :  { %s18_s14 = sshll.u32 %s113_s1, 4  ;;  %s19_s14 = int_to_ptr.vmem [resolvable:$true] %s18_s14 }
   0x2   :  { %s63_s15 = scalar_lea.vmem %s19_s14, 16  ;;  %p68_p1 = scmp.lt.s32.totalorder %s19_s14, %s19_s14 }
   0x3   :  { %p64_p0 = scmp.ne.s32.totalorder %s19_s14, %s63_s15  ;;  %p69_p2 = scmp.lt.s32.totalorder %s63_s15, %s63_s15 }
   0x5   :  { %p70_p3 = por %p69_p2, %p68_p1 }
   0x7   :  { %p71_p4 = pnand %p70_p3, %p64_p0 }
   0x9   :  { %74 = shalt.err (!%p71_p4)
}
   0xa   :  { %s77_s16 = smov [#allocation3]  }
   0xb   :  { %21 = dma.vmem_to_smem %s19_s14, 16, %s77_s16, [#allocation4]  }
   0xc   :  { %75 = dma.done.wait [#allocation4], 16  }
   0xd   :  { %76 = vsyncadd [#allocation4], 4294967280 }
   0xe   :  { %27 = sfence }
   0xf   :  { %s58_s17 = sld [smem:[#allocation3 + $0x1]]  ;;  %s59_s18 = sld [smem:[#allocation3 + $0x2]]  ;;  %v28_v0 = vld [vmem:[%s112_s0] sm:$0xff]  ;;  %v49_v9 = vstv %s114_s2  ;;  %vm51_vm0 = vcmask 7168  }
  0x10   :  { %s78_s1 = smov 127   ;;  %s79_s21 = smov 126  }
  0x11   :  { %s29_s22 = sld [smem:[#allocation3]] }
  0x15   :  { %v33_v1 = vstv %s58_s17  ;;  %v41_v3 = vstv %s59_s18 }
  0x16   :  { %v34_v2 = vmul.f32 %v33_v1, %v28_v0  ;;  %v42_v4 = vmul.f32 %v41_v3, %v28_v0 }
  0x17   :  { %v30_v5 = vstv %s29_s22 }
  0x18   :  { %36 = vrot.lane.b32.xlu0 %v34_v2, %s78_s1  ;;  %v31_v6 = vmul.f32 %v30_v5, %v28_v0 }
  0x1c   :  { %44 = vrot.lane.b32.xlu0 %v42_v4, %s79_s21 }
  0x8a   :  { %v37_v7 = vpop.permute.xlu0 %36 }
  0x8b   :  { %v39_v8 = vadd.f32 %v37_v7, %v31_v6 }
  0x8e   :  { %v45_v10 = vpop.permute.xlu0 %44 }
  0x8f   :  { %v47_v11 = vadd.f32 %v45_v10, %v39_v8 }
  0x91   :  { %v50_v12 = vadd.f32 %v49_v9, %v47_v11 }
  0x93   :  { %52 = vst.msk [vmem:[%s115_s3] sm:$0xff] %vm51_vm0, %v50_v12 }
  0x94   :  { %57 = vsyncpa [#allocation4], 1 }

</bundles_post_ra>
